<compile_context>
chip_gen: v6e
topology: v6e:2x2x1
jax: 0.10.0
libtpu: 0.0.40
codegen_flags: <defaults>
</compile_context>

<pallas_src>
import jax
import jax.numpy as jnp
from jax.experimental import pallas as pl
from jax.experimental.pallas import tpu as pltpu

_LANE = 128
_SUBLANE = 8
# 2048 x 128 f32 tile = 1 MiB.  6 x tile (2 inputs + 1 output, double-buffered)
# = 6 MiB resident worst case -> fits the 16 MiB v5e scoped default with room.
_MAX_BLOCK_ROWS = 2048


def _blend_kernel(alpha_ref, text_ref, series_ref, out_ref):
    """out = series + sigmoid_alpha * (text - series), elementwise."""
    a = alpha_ref[0]                  # post-sigmoid gate, f32 scalar from SMEM (free splat)
    t = text_ref[...]
    s = series_ref[...]
    if t.dtype != jnp.float32:        # upcast in-register only (v5e has no bf16 VPU)
        t = t.astype(jnp.float32)
        s = s.astype(jnp.float32)
    out_ref[...] = (s + a * (t - s)).astype(out_ref.dtype)


def tts_timemmd_forward(text_pred, series_pred, alpha, *,
                        min_pallas_elems=4096, force_pallas=False):
    """Pallas implementation of TTS_TimeMMD.forward."""
    assert text_pred.shape == series_pred.shape
    orig_shape = text_pred.shape

    out_dtype = jnp.result_type(text_pred.dtype, series_pred.dtype)
    if text_pred.dtype != out_dtype:
        text_pred = text_pred.astype(out_dtype)
    if series_pred.dtype != out_dtype:
        series_pred = series_pred.astype(out_dtype)

    # sigmoid of the single learnable scalar: O(1) work (not an HBM pass),
    # hoisted here because the TPU scalar core has no transcendental unit.
    alpha_sig = jax.nn.sigmoid(jnp.asarray(alpha, jnp.float32)).reshape(1)

    n = text_pred.size
    if n < min_pallas_elems and not force_pallas:
        # Tiny inputs: a single fused XLA elementwise op beats pallas_call
        # fixed overhead by a wide margin.
        a = alpha_sig[0]
        t32 = text_pred.astype(jnp.float32)
        s32 = series_pred.astype(jnp.float32)
        return (s32 + a * (t32 - s32)).astype(out_dtype)

    # Lane-dense [rows, 128] view.  reshape of a contiguous array is
    # metadata-only; padding is needed only when n is not a multiple of 128,
    # and then only by < 128 elements (the rows axis stays ragged and is
    # handled by Pallas boundary masking, not by padding to a block multiple).
    t_flat = text_pred.reshape(-1)
    s_flat = series_pred.reshape(-1)
    rem = n % _LANE
    pad = (_LANE - rem) if rem else 0
    if pad:
        t_flat = jnp.pad(t_flat, (0, pad))
        s_flat = jnp.pad(s_flat, (0, pad))
    rows = (n + pad) // _LANE
    t2 = t_flat.reshape(rows, _LANE)
    s2 = s_flat.reshape(rows, _LANE)

    if rows <= _SUBLANE:
        block_rows = rows            # single full-extent block (full-dim exception)
    else:
        # At least 2 grid steps so the "parallel" axis can be sharded across
        # v7x's 2 TensorCores; capped at a ~1 MiB (f32) per-operand tile.
        half = pl.cdiv(rows, 2)
        block_rows = min(_MAX_BLOCK_ROWS, pl.cdiv(half, _SUBLANE) * _SUBLANE)

    grid = (pl.cdiv(rows, block_rows),)
    itemsize = jnp.dtype(out_dtype).itemsize

    out2 = pl.pallas_call(
        _blend_kernel,
        out_shape=jax.ShapeDtypeStruct((rows, _LANE), out_dtype),
        grid=grid,
        in_specs=[
            pl.BlockSpec(memory_space=pltpu.MemorySpace.SMEM),      # sigmoid(alpha) scalar
            pl.BlockSpec((block_rows, _LANE), lambda i: (i, 0)),    # text_pred
            pl.BlockSpec((block_rows, _LANE), lambda i: (i, 0)),    # series_pred
        ],
        out_specs=pl.BlockSpec((block_rows, _LANE), lambda i: (i, 0)),
        compiler_params=pltpu.CompilerParams(
            dimension_semantics=("parallel",)),
        cost_estimate=pl.CostEstimate(
            flops=3 * n, transcendentals=0, bytes_accessed=3 * n * itemsize),
    )(alpha_sig, t2, s2)

    out_flat = out2.reshape(-1)
    if pad:
        out_flat = out_flat[:n]      # only on the ragged-tail path
    return out_flat.reshape(orig_shape)


if __name__ == "__main__":
    key = jax.random.PRNGKey(0)
    fwd = jax.jit(tts_timemmd_forward,
                  static_argnames=("min_pallas_elems", "force_pallas"))

    # --- Test 1: f32, n % 128 == 0 (pad-free path, 2 grid steps) ------------
    B, series_length, pred_len = 128, 16, 32   # series_length unused by this module
    k1, k2 = jax.random.split(key, 2)
    text_pred = jax.random.normal(k1, (B, pred_len, 1), jnp.float32)
    series_pred = jax.random.normal(k2, (B, pred_len, 1), jnp.float32)
    alpha = jnp.float32(0.5)                    # nn.Parameter(torch.tensor(0.5)) init

    out = fwd(text_pred, series_pred, alpha, force_pallas=True)
    out = jax.block_until_ready(out)

    a_ref = jax.nn.sigmoid(jnp.float32(0.5))
    ref = (1.0 - a_ref) * series_pred + a_ref * text_pred
    assert out.shape == ref.shape and out.dtype == ref.dtype
    assert jnp.allclose(out, ref, atol=1e-5, rtol=1e-5)

    # --- Test 2: bf16 native-dtype I/O, ragged n (in-kernel masked tail) ----
    k3, k4 = jax.random.split(k2, 2)
    tp16 = jax.random.normal(k3, (4, 24, 1), jnp.float32).astype(jnp.bfloat16)
    sp16 = jax.random.normal(k4, (4, 24, 1), jnp.float32).astype(jnp.bfloat16)
    out16 = fwd(tp16, sp16, alpha, force_pallas=True)
    out16 = jax.block_until_ready(out16)
    ref16 = ((1.0 - a_ref) * sp16.astype(jnp.float32)
             + a_ref * tp16.astype(jnp.float32)).astype(jnp.bfloat16)
    assert out16.shape == ref16.shape and out16.dtype == jnp.bfloat16
    assert jnp.allclose(out16.astype(jnp.float32), ref16.astype(jnp.float32),
                        atol=1e-2, rtol=1e-2)

    print("KERNEL_OK")
</pallas_src>

<mosaic_0001>
module attributes {stable_mosaic.version = 11 : i64} {
  func.func @_blend_kernel(%arg0: i32, %arg1: memref<1xf32, #tpu.memory_space<smem>>, %arg2: memref<16x128xf32, #tpu.memory_space<vmem>>, %arg3: memref<16x128xf32, #tpu.memory_space<vmem>>, %arg4: memref<16x128xf32, #tpu.memory_space<vmem>>) attributes {dimension_semantics = [#tpu.dimension_semantics<parallel>], iteration_bounds = array<i64: 2>, scalar_prefetch = 0 : i64, scratch_operands = 0 : i64, tpu.core_type = #tpu.core_type<tc>, window_params = [{transform_indices = @transform_0, window_bounds = array<i64: 1>}, {transform_indices = @transform_1, window_bounds = array<i64: 16, 128>}, {transform_indices = @transform_2, window_bounds = array<i64: 16, 128>}, {transform_indices = @transform_3, window_bounds = array<i64: 16, 128>}]} {
    %c0 = arith.constant 0 : index
    %0 = memref.load %arg1[%c0] : memref<1xf32, #tpu.memory_space<smem>>
    %c0_0 = arith.constant 0 : index
    %c0_1 = arith.constant 0 : index
    %1 = vector.load %arg2[%c0_0, %c0_1] : memref<16x128xf32, #tpu.memory_space<vmem>>, vector<16x128xf32>
    %c0_2 = arith.constant 0 : index
    %c0_3 = arith.constant 0 : index
    %2 = vector.load %arg3[%c0_2, %c0_3] : memref<16x128xf32, #tpu.memory_space<vmem>>, vector<16x128xf32>
    %3 = arith.subf %1, %2 : vector<16x128xf32>
    %4 = vector.broadcast %0 : f32 to vector<16x128xf32>
    %5 = arith.mulf %4, %3 : vector<16x128xf32>
    %6 = arith.addf %2, %5 : vector<16x128xf32>
    %c0_4 = arith.constant 0 : index
    %c0_5 = arith.constant 0 : index
    %7 = vector.load %arg4[%c0_4, %c0_5] : memref<16x128xf32, #tpu.memory_space<vmem>>, vector<16x128xf32>
    tpu.vector_store %arg4[%c0_4, %c0_5], %6 {strides = array<i32>} : memref<16x128xf32, #tpu.memory_space<vmem>>, vector<16x128xf32>,
    return
  }
  func.func @transform_0(%arg0: i32) -> i32 {
    %c0_i32 = arith.constant 0 : i32
    %c0_i32_0 = arith.constant 0 : i32
    return %c0_i32 : i32
  }
  func.func @transform_1(%arg0: i32) -> (i32, i32) {
    %c0_i32 = arith.constant 0 : i32
    %c0_i32_0 = arith.constant 0 : i32
    return %arg0, %c0_i32 : i32, i32
  }
  func.func @transform_2(%arg0: i32) -> (i32, i32) {
    %c0_i32 = arith.constant 0 : i32
    %c0_i32_0 = arith.constant 0 : i32
    return %arg0, %c0_i32 : i32, i32
  }
  func.func @transform_3(%arg0: i32) -> (i32, i32) {
    %c0_i32 = arith.constant 0 : i32
    %c0_i32_0 = arith.constant 0 : i32
    return %arg0, %c0_i32 : i32, i32
  }
}

</mosaic_0001>

<bundles_post_ra>
// kernel: tts_timemmd_forward.1
= control target key start
LH: loop header
LB: loop body
LE: loop exit
PB: predicated region body
PF: predicated region fallthrough
CT: control target
= control target key end

     0   :  { %s331_s14 = smov 0   ;;  %s351_s0 = inlined_call_operand.<no memory space> [shape: f32[1], index: 0, kind: input, shape index: {}]   ;;  %s352_s1 = inlined_call_operand.vmem [shape: f32[32,128], index: 1, kind: input, shape index: {}]   ;;  %s353_s2 = inlined_call_operand.vmem [shape: f32[32,128], index: 2, kind: input, shape index: {}]   ;;  %s354_s3 = inlined_call_operand.vmem [shape: f32[32,128], index: 3, kind: output, shape index: {}]  }
   0x1   :  { %8 = sst [smem:[#allocation2]] %s351_s0 }
   0x2 LB: > { %s279_s15 = sadd.s32 4294967295, %s306_s14   ;;  %p283_p0 = scmp.ge.s32.totalorder %s306_s14, 1  ;;  %s306_s14 = sphi %s331_s14, %s14_s14  }
   0x3   : > { %p150_p1 = scmp.lt.s32.totalorder %s306_s14, 3 }
   0x5   : > { %p151_p2 = pnand %p283_p0, %p150_p1 }
   0x6   : > { %s284_s16 = sshll.u32 (!%p151_p2), %s279_s15, 1  ;;  %s197_s17 = sld [smem:[#allocation2]] (!%p151_p2) }
   0x7   : > { %154 = sbr.rel (%p151_p2) target bundleno = 24 (0x18), region = 32  ;;  %p180_p3 = scmp.lt.s32.totalorder (!%p151_p2), %s284_s16, 3 }
   0xc   : > { %s356_s16 = smov (!%p180_p3, %s284_s16), 3  ;;  %v204_v3 = vstv %s197_s17 }
   0xd   : > { %s285_s0 = sshll.u32 %s356_s16, 3 }
   0xe   : > { %s183_s20 = scalar_lea.vmem %s352_s1, %s285_s0  ;;  %s189_s23 = scalar_lea.vmem %s353_s2, %s285_s0 }
   0xf   : > { %v198_v0 = vld [vmem:[%s183_s20] sm:$0xff]  ;;  %v199_v1 = vld [vmem:[%s183_s20 + $0x8] sm:$0xff]  ;;  %s195_s26 = scalar_lea.vmem %s354_s3, %s285_s0 }
  0x10   : > { %v200_v2 = vld [vmem:[%s189_s23] sm:$0xff]  ;;  %v201_v4 = vld [vmem:[%s189_s23 + $0x8] sm:$0xff] }
  0x11   : > { %v202_v5 = vsub.f32 %v198_v0, %v200_v2  ;;  %v203_v6 = vsub.f32 %v199_v1, %v201_v4 }
  0x13   : > { %v205_v7 = vmul.f32 %v204_v3, %v202_v5  ;;  %v206_v8 = vmul.f32 %v204_v3, %v203_v6 }
  0x15   : > { %v207_v9 = vadd.f32 %v205_v7, %v200_v2  ;;  %v208_v10 = vadd.f32 %v206_v8, %v201_v4 }
  0x17   : > { %209 = vst [vmem:[%s195_s26] sm:$0xff] %v207_v9  ;;  %210 = vst [vmem:[%s195_s26 + $0x8] sm:$0xff] %v208_v10 }
  0x18 PF: > { %s14_s14 = sadd.s32 1, %s306_s14  }
  0x19   : > { %p11_p4 = scmp.ge.s32.totalorder %s14_s14, 4  }
  0x1b   :  { %13 = sbr.rel (!%p11_p4) target bundleno = 2 (0x2), region = 65 }

</bundles_post_ra>
